<compile_context>
chip_gen: v7x
topology: tpu7x:2x2x1
jax: 0.10.0
libtpu: 0.0.40
codegen_flags: <defaults>
</compile_context>

<pallas_src>
import functools

import jax
import jax.numpy as jnp
from jax.experimental import pallas as pl
from jax.experimental.pallas import tpu as pltpu


def _pool_kernel(x_ref, sum_ref):
    # x_ref: (C, hw_tile) in x's native dtype.
    # sum_ref: (C, 1) f32 output block, resident across the (arbitrary)
    # spatial-tile axis -> acts as the accumulator.
    @pl.when(pl.program_id(1) == 0)
    def _():
        sum_ref[...] = jnp.zeros_like(sum_ref)

    sum_ref[...] += jnp.sum(x_ref[...], axis=1, keepdims=True,
                            dtype=jnp.float32)


def _fc_kernel(pooled_ref, w1t_ref, b1_ref, w2t_ref, b2_ref, y_ref, *, inv_hw):
    # pooled_ref: (N, C) f32 spatial sums.  Weights are pre-transposed so both
    # matmuls are batched over N (amortized once, not once per sample).
    p = pooled_ref[...] * inv_hw                                     # (N, C)
    h = jnp.dot(p, w1t_ref[...],
                preferred_element_type=jnp.float32) + b1_ref[...]    # (N, C8)
    h = jnp.maximum(h, 0.0)
    z = jnp.dot(h, w2t_ref[...],
                preferred_element_type=jnp.float32) + b2_ref[...]    # (N, C)
    y_ref[...] = jax.nn.sigmoid(z)


def _scale_kernel(x_ref, y_ref, o_ref):
    # x_ref/o_ref: (C, hw_tile) native dtype; y_ref: (C, 1) f32 weights.
    o_ref[...] = (x_ref[...] * y_ref[...].astype(x_ref.dtype)).astype(o_ref.dtype)


def ca_layer(x, w1, b1, w2, b2, *, max_block_bytes=1 << 20):
    """Channel-attention layer (matches PyTorch CALayer.forward).

    x : (N, C, H, W)
    w1: (C//8, C)   b1: (C//8,)   -- first 1x1 conv
    w2: (C, C//8)   b2: (C,)      -- second 1x1 conv
    """
    N, C, H, W = x.shape
    C8 = w1.shape[0]
    HW = H * W
    itemsize = jnp.dtype(x.dtype).itemsize

    # Lane-dense spatial tile: multiple of 128 lanes, bounded to ~1 MiB/block.
    max_lanes = max(128, (max_block_bytes // (C * itemsize)) // 128 * 128)
    hw_tile = min(max_lanes, pl.cdiv(HW, 128) * 128)
    n_hw = pl.cdiv(HW, hw_tile)
    hw_pad = n_hw * hw_tile

    x_flat = x.reshape(N, C, HW)
    if hw_pad != HW:
        # Zero padding: does not change the spatial sum (we scale by 1/HW),
        # and padded output columns are sliced off below.
        x_flat = jnp.pad(x_flat, ((0, 0), (0, 0), (0, hw_pad - HW)))

    cparams_reduce = pltpu.CompilerParams(
        dimension_semantics=("parallel", "arbitrary"),
        vmem_limit_bytes=32 << 20)
    cparams_parallel = pltpu.CompilerParams(
        dimension_semantics=("parallel", "parallel"),
        vmem_limit_bytes=32 << 20)

    # ---- pass 1: per-channel spatial sums (f32 accumulation) --------------
    pooled = pl.pallas_call(
        _pool_kernel,
        out_shape=jax.ShapeDtypeStruct((N, C, 1), jnp.float32),
        grid_spec=pltpu.PrefetchScalarGridSpec(
            num_scalar_prefetch=0,
            grid=(N, n_hw),
            in_specs=[pl.BlockSpec((pl.Squeezed(), C, hw_tile),
                                   lambda n, t: (n, 0, t))],
            out_specs=pl.BlockSpec((pl.Squeezed(), C, 1),
                                   lambda n, t: (n, 0, 0)),
        ),
        compiler_params=cparams_reduce,
    )(x_flat)

    # ---- pass 2: batched 1x1-conv bottleneck + sigmoid (tiny, done once) ---
    y = pl.pallas_call(
        functools.partial(_fc_kernel, inv_hw=1.0 / float(HW)),
        out_shape=jax.ShapeDtypeStruct((N, C), jnp.float32),
    )(pooled[:, :, 0], w1.T, b1.reshape(1, C8), w2.T, b2.reshape(1, C))

    # ---- pass 3: broadcast-multiply the attention weights onto x ----------
    out = pl.pallas_call(
        _scale_kernel,
        out_shape=jax.ShapeDtypeStruct((N, C, hw_pad), x.dtype),
        grid_spec=pltpu.PrefetchScalarGridSpec(
            num_scalar_prefetch=0,
            grid=(N, n_hw),
            in_specs=[
                pl.BlockSpec((pl.Squeezed(), C, hw_tile),
                             lambda n, t: (n, 0, t)),
                pl.BlockSpec((pl.Squeezed(), C, 1),
                             lambda n, t: (n, 0, 0)),
            ],
            out_specs=pl.BlockSpec((pl.Squeezed(), C, hw_tile),
                                   lambda n, t: (n, 0, t)),
        ),
        compiler_params=cparams_parallel,
    )(x_flat, y[:, :, None])

    if hw_pad != HW:
        out = out[:, :, :HW]
    return out.reshape(N, C, H, W)


def _reference(x, w1, b1, w2, b2):
    # Pure-JAX reference of the PyTorch forward.
    pooled = jnp.mean(x, axis=(2, 3))                         # (N, C)
    h = jnp.maximum(pooled @ w1.T + b1, 0.0)                  # (N, C//8)
    y = jax.nn.sigmoid(h @ w2.T + b2)                         # (N, C)
    return x * y[:, :, None, None]


if __name__ == "__main__":
    # Channel count must be a multiple of 8 (C//8 >= 1 for the bottleneck).
    N, C, H, W = 2, 16, 16, 16
    C8 = C // 8

    key = jax.random.PRNGKey(0)
    k_x, k_w1, k_b1, k_w2, k_b2 = jax.random.split(key, 5)

    x = jax.random.normal(k_x, (N, C, H, W), dtype=jnp.float32)
    # Synthetic 1x1-conv parameters as dense matrices.
    w1 = jax.random.normal(k_w1, (C8, C), dtype=jnp.float32) * 0.1
    b1 = jax.random.normal(k_b1, (C8,), dtype=jnp.float32) * 0.1
    w2 = jax.random.normal(k_w2, (C, C8), dtype=jnp.float32) * 0.1
    b2 = jax.random.normal(k_b2, (C,), dtype=jnp.float32) * 0.1

    out = ca_layer(x, w1, b1, w2, b2)
    out = jax.block_until_ready(out)

    ref = _reference(x, w1, b1, w2, b2)
    assert out.shape == (N, C, H, W)
    assert jnp.allclose(out, ref, atol=1e-5, rtol=1e-5), "mismatch vs reference"

    print("KERNEL_OK")
</pallas_src>

<mosaic_0001>
module attributes {stable_mosaic.version = 11 : i64} {
  func.func @_pool_kernel(%arg0: i32, %arg1: i32, %arg2: memref<1x16x256xf32, #tpu.memory_space<vmem>>, %arg3: memref<1x16x1xf32, #tpu.memory_space<vmem>>) attributes {dimension_semantics = [#tpu.dimension_semantics<parallel>, #tpu.dimension_semantics<arbitrary>], iteration_bounds = array<i64: 2, 1>, scalar_prefetch = 0 : i64, scratch_operands = 0 : i64, tpu.core_type = #tpu.core_type<tc>, window_params = [{transform_indices = @transform_0, window_bounds = array<i64: 1, 16, 256>}, {transform_indices = @transform_1, window_bounds = array<i64: 1, 16, 1>}]} {
    %c0_i32 = arith.constant 0 : i32
    %0 = arith.cmpi eq, %arg1, %c0_i32 : i32
    %1 = arith.extui %0 : i1 to i32
    %c0_i32_0 = arith.constant 0 : i32
    %2 = arith.cmpi ne, %1, %c0_i32_0 : i32
    scf.if %2 {
      %cst_9 = arith.constant 0.000000e+00 : f32
      %13 = vector.broadcast %cst_9 : f32 to vector<16x1xf32>
      %c0_10 = arith.constant 0 : index
      %c0_11 = arith.constant 0 : index
      %c0_12 = arith.constant 0 : index
      %14 = vector.load %arg3[%c0_10, %c0_11, %c0_12] : memref<1x16x1xf32, #tpu.memory_space<vmem>>, vector<1x16x1xf32>
      %15 = vector.shape_cast %14 : vector<1x16x1xf32> to vector<16x1xf32>
      %16 = vector.shape_cast %13 : vector<16x1xf32> to vector<1x16x1xf32>
      tpu.vector_store %arg3[%c0_10, %c0_11, %c0_12], %16 {strides = array<i32>} : memref<1x16x1xf32, #tpu.memory_space<vmem>>, vector<1x16x1xf32>,
    } else {
    }
    %c0 = arith.constant 0 : index
    %c0_1 = arith.constant 0 : index
    %c0_2 = arith.constant 0 : index
    %3 = vector.load %arg3[%c0, %c0_1, %c0_2] : memref<1x16x1xf32, #tpu.memory_space<vmem>>, vector<1x16x1xf32>
    %4 = vector.shape_cast %3 : vector<1x16x1xf32> to vector<16x1xf32>
    %c0_3 = arith.constant 0 : index
    %c0_4 = arith.constant 0 : index
    %c0_5 = arith.constant 0 : index
    %5 = vector.load %arg2[%c0_3, %c0_4, %c0_5] : memref<1x16x256xf32, #tpu.memory_space<vmem>>, vector<1x16x256xf32>
    %6 = vector.shape_cast %5 : vector<1x16x256xf32> to vector<16x256xf32>
    %cst = arith.constant dense<0.000000e+00> : vector<16xf32>
    %7 = vector.multi_reduction <add>, %6, %cst [1] : vector<16x256xf32> to vector<16xf32>
    %8 = vector.shape_cast %7 : vector<16xf32> to vector<16x1xf32>
    %9 = arith.addf %4, %8 : vector<16x1xf32>
    %c0_6 = arith.constant 0 : index
    %c0_7 = arith.constant 0 : index
    %c0_8 = arith.constant 0 : index
    %10 = vector.load %arg3[%c0_6, %c0_7, %c0_8] : memref<1x16x1xf32, #tpu.memory_space<vmem>>, vector<1x16x1xf32>
    %11 = vector.shape_cast %10 : vector<1x16x1xf32> to vector<16x1xf32>
    %12 = vector.shape_cast %9 : vector<16x1xf32> to vector<1x16x1xf32>
    tpu.vector_store %arg3[%c0_6, %c0_7, %c0_8], %12 {strides = array<i32>} : memref<1x16x1xf32, #tpu.memory_space<vmem>>, vector<1x16x1xf32>,
    return
  }
  func.func @transform_0(%arg0: i32, %arg1: i32) -> (i32, i32, i32) {
    %c0_i32 = arith.constant 0 : i32
    %c0_i32_0 = arith.constant 0 : i32
    return %arg0, %c0_i32, %arg1 : i32, i32, i32
  }
  func.func @transform_1(%arg0: i32, %arg1: i32) -> (i32, i32, i32) {
    %c0_i32 = arith.constant 0 : i32
    %c0_i32_0 = arith.constant 0 : i32
    %c0_i32_1 = arith.constant 0 : i32
    return %arg0, %c0_i32, %c0_i32_0 : i32, i32, i32
  }
}

</mosaic_0001>

<bundles_post_ra>
// kernel: tpu_custom_call.1
= control target key start
LH: loop header
LB: loop body
LE: loop exit
PB: predicated region body
PF: predicated region fallthrough
CT: control target
= control target key end

     0   :  { %6 = vsyncpa [#allocation3], 0  ;;  %s553_s0 = inlined_call_operand.hbm [shape: f32[2,16,256], index: 0, kind: input, shape index: {}]   ;;  %s554_s1 = inlined_call_operand.vmem [shape: f32[2,16,1], index: 1, kind: output, shape index: {}]  }
   0x1   :  { %8 = vsyncpa [#allocation3 + $0x1], 0  ;;  %s425_s6 = smov 0   ;;  %s427_s7 = smov 0  }
   0x2   :  { %s429_s8 = smov 0   ;;  %s431_s9 = smov 0  }
   0x3   :  { %s433_s10 = smov 0   ;;  %s435_s11 = smov 0  }
   0x4 LB: > { %s256_s12 = sadd.s32 4294967295, %s409_s11   ;;  %s26_s13 = sadd.s32 1, %s405_s10  ;;  %s409_s11 = sphi %s435_s11, %s14_s11   ;;  %s405_s10 = sphi %s433_s10, %s562_s10   ;;  %s401_s9 = sphi %s431_s9, %s561_s9   ;;  %s397_s8 = sphi %s429_s8, %s560_s8   ;;  %s393_s7 = sphi %s427_s7, %s559_s7   ;;  %s389_s6 = sphi %s425_s6, %s558_s6  }
   0x5   : > { %p28_p0 = scmp.ge.s32.totalorder %s26_s13, 2  ;;  %s35_s14 = sadd.s32 1, %s397_s8 }
   0x6   : > { %p42_p1 = scmp.ne.s32.totalorder %s397_s8, %s393_s7  ;;  %p43_p2 = scmp.eq.s32.totalorder %s409_s11, 0 }
   0x7   : > { %s564_s13 = smov (%p28_p0, %s26_s13), 0  ;;  %p48_p4 = scmp.ne.s32.totalorder %s393_s7, %s389_s6 }
   0x8   : > { %p461_p3 = por %p43_p2, %p42_p1  ;;  %s30_s16 = ssub.s32 %s405_s10, %s564_s13 }
   0x9   : > { %p49_p5 = scmp.eq.s32.totalorder %s256_s12, 0  ;;  %p33_p6 = scmp.eq.s32.totalorder %s30_s16, 0 }
   0xa   : > { %p277_p8 = scmp.lt.s32.totalorder %s409_s11, 2  ;;  %s98_s19 = sand.u32 1, %s397_s8  }
   0xb   : > { %p468_p7 = por %p49_p5, %p48_p4  ;;  %s269_s20 = sshll.u32 %s405_s10, 9 }
   0xc   : > { %s474_s18 = scalar_select %p33_p6, %s397_s8, %s35_s14  }
   0xd   : > { %s260_s21 = sshll.u32 %s98_s19, 5  ;;  %s481_s24 = scalar_lea.hbm %s553_s0, %s269_s20 }
   0xe   : > { %s102_s25 = scalar_lea.vmem [#allocation2], %s260_s21  ;;  %p485_p9 = pnand %p277_p8, %p461_p3 }
   0xf   : > { %s111_s26 = sshll.u32 %s102_s25, 4  ;;  %s491_s28 = scalar_lea.sflag [#allocation3], %s98_s19  ;;  %s489_s26 = int_to_ptr.vmem [resolvable:$true] %s111_s26 }
  0x10   : > { %s329_s29 = scalar_lea.hbm %s481_s24, 512  ;;  %p331_p11 = pneg %p485_p9 }
  0x11   : > { %p330_p10 = scmp.ne.s32.totalorder %s481_s24, %s329_s29  ;;  %s334_s3 = scalar_lea.hbm %s553_s0, 1024 }
  0x12   : > { %p335_p0 = scmp.lt.u32.totalorder %s481_s24, %s553_s0  ;;  %p336_p1 = scmp.lt.u32.totalorder %s334_s3, %s329_s29 }
  0x13   : > { %p332_p12 = pnand %p331_p11, %p330_p10  ;;  %p338_p3 = scmp.lt.u32.totalorder %s329_s29, %s481_s24 }
  0x14   : > { %p337_p2 = por %p336_p1, %p335_p0 }
  0x15   : > { %p333_p13 = pneg %p332_p12 }
  0x16   : > { %p339_p4 = por %p338_p3, %p337_p2 }
  0x18   : > { %p340_p5 = pnand %p339_p4, %p333_p13 }
  0x1a   : > { %343 = shalt.err (!%p340_p5)
}
  0x1b   : > { %s344_s6 = scalar_lea.vmem %s489_s26, 512  ;;  %s411_s12 = smov [#allocation2]  }
  0x1c   : > { %p345_p6 = scmp.ne.s32.totalorder %s489_s26, %s344_s6  ;;  %s349_s14 = sshll.u32 %s411_s12, 4  ;;  %s350_s14 = int_to_ptr.vmem [resolvable:$false] %s349_s14 }
  0x1d   : > { %s351_s15 = scalar_lea.vmem %s350_s14, 1024  ;;  %p352_p12 = scmp.lt.s32.totalorder %s489_s26, %s350_s14 }
  0x1e   : > { %p347_p8 = pnand %p345_p6, %p331_p11  ;;  %p353_p0 = scmp.lt.s32.totalorder %s351_s15, %s344_s6 }
  0x20   : > { %p348_p10 = pneg %p347_p8  ;;  %p354_p1 = por %p353_p0, %p352_p12 }
  0x22   : > { %p355_p2 = pnand %p354_p1, %p348_p10 }
  0x24   : > { %358 = shalt.err (!%p355_p2)
}
  0x25   : > { %s412_s16 = smov 256   ;;  %s413_s19 = smov 16  }
  0x26   : > { %276 = dma.hbm_to_vmem [thread:$0]  (!%p485_p9), %s481_s24, 512, %s489_s26, %s491_s28, %s412_s16, %s412_s16, %s413_s19  }
  0x27   : > { %p263_p11 = scmp.ge.s32.totalorder %s409_s11, 1  ;;  %p119_p13 = scmp.lt.s32.totalorder %s409_s11, 3 }
  0x29   : > { %p120_p3 = pnand %p263_p11, %p119_p13 }
  0x2a   : > { %s125_s20 = sand.u32 (!%p120_p3), 1, %s393_s7  }
  0x2b   : > { %123 = sbr.rel (%p120_p3) target bundleno = 203 (0xcb), region = 24  ;;  %s264_s21 = sshll.u32 (!%p120_p3), %s125_s20, 5 }
  0x2c   : > { %s126_s22 = scalar_lea.sflag (!%p120_p3), [#allocation3], %s125_s20  ;;  %s129_s23 = scalar_lea.vmem (!%p120_p3), [#allocation2], %s264_s21 }
  0x32   : > { %384 = dma.done.wait (%p468_p7), %s126_s22, 512  }
  0x33   : > { %386 = vsyncadd (%p468_p7), %s126_s22, 4294966784  ;;  %p149_p4 = scmp.lt.s32.totalorder %s401_s9, 1  ;;  %vm158_vm0 = vcmask 7168   ;;  %v414_v0 = vmov 0.0   ;;  %v163_v1 = vld [vmem:[%s129_s23] sm:$0xff]  ;;  %v164_v2 = vld [vmem:[%s129_s23 + $0x8] sm:$0xff] }
  0x34   : > { %v165_v3 = vld [vmem:[%s129_s23 + $0x10] sm:$0xff]  ;;  %v167_v4 = vadd.f32 %v164_v2, %v163_v1  ;;  %v166_v5 = vld [vmem:[%s129_s23 + $0x18] sm:$0xff] }
  0x35   : > { %s566_s9 = smov (!%p149_p4, %s401_s9), 1  ;;  %v170_v6 = vadd.f32 %v166_v5, %v165_v3 }
  0x36   : > { %s270_s24 = sshll.u32 %s566_s9, 4  ;;  %168 = vadd.xlane.f32.xlu0 %v167_v4 }
  0x37   : > { %s153_s27 = scalar_lea.vmem %s554_s1, %s270_s24 }
  0x38   : > { %159 = vst.msk [vmem:[%s153_s27] sm:$0xff] %vm158_vm0, %v414_v0  ;;  %160 = vst.msk [vmem:[%s153_s27 + $0x8] sm:$0xff] %vm158_vm0, %v414_v0 }
  0x3a   : > { %171 = vadd.xlane.f32.xlu0 %v170_v6 }
  0x3f   : > { %v161_v7 = vld [vmem:[%s153_s27] sm:$0xff]  ;;  %v162_v10 = vld [vmem:[%s153_s27 + $0x8] sm:$0xff] }
  0xc3   : > { %v169_v8 = vpop.xlane.xlu0 %168 }
  0xc4   : > { %v173_v9 = vadd.f32 %v169_v8, %v161_v7 }
  0xc6   : > { %176 = vst.msk [vmem:[%s153_s27] sm:$0xff] %vm158_vm0, %v173_v9 }
  0xc7   : > { %v172_v11 = vpop.xlane.xlu0 %171 }
  0xc8   : > { %v174_v12 = vadd.f32 %v172_v11, %v162_v10 }
  0xca   : > { %177 = vst.msk [vmem:[%s153_s27 + $0x8] sm:$0xff] %vm158_vm0, %v174_v12 }
  0xcb PF: > { %s14_s11 = sadd.s32 1, %s409_s11   ;;  %s558_s6 = smov %s393_s7 }
  0xcc   : > { %p11_p7 = scmp.ge.s32.totalorder %s14_s11, 4   ;;  %s559_s7 = smov %s397_s8 }
  0xcd   : > { %s560_s8 = smov %s474_s18  ;;  %s561_s9 = smov %s405_s10 }
  0xce   : > { %s562_s10 = smov %s564_s13  ;;  %13 = sbr.rel (!%p11_p7) target bundleno = 4 (0x4), region = 68 }
  0xd5   :  { %199 = vsyncpa [#allocation3], 1 }
  0xd6   :  { %201 = vsyncpa [#allocation3 + $0x1], 1 }

</bundles_post_ra>
